<compile_context>
chip_gen: v6e
topology: v6e:2x2x1
jax: 0.10.0
libtpu: 0.0.40
codegen_flags: <defaults>
</compile_context>

<pallas_src>
import functools

import jax
import jax.numpy as jnp
from jax.experimental import pallas as pl
from jax.experimental.pallas import tpu as pltpu


def _round_up(x, m):
    return (x + m - 1) // m * m


# ----------------------------------------------------------------------------
# Kernel: one batch tile, all weights resident in VMEM.
# ----------------------------------------------------------------------------
def _ppo_mlp_kernel(x_ref,
                    w1_ref, b1_ref,
                    w2_ref, b2_ref,
                    w3_ref, b3_ref,
                    wh_ref, bh_ref,
                    out_ref):
    compute_dtype = w1_ref.dtype  # f32 or bf16 (matmul operand dtype)

    h = x_ref[...].astype(compute_dtype)

    # hidden 1 + ReLU  (f32 accumulate; bias/ReLU in f32 on the VPU)
    h = jnp.dot(h, w1_ref[...], preferred_element_type=jnp.float32) + b1_ref[...]
    h = jnp.maximum(h, 0.0).astype(compute_dtype)

    # hidden 2 + ReLU
    h = jnp.dot(h, w2_ref[...], preferred_element_type=jnp.float32) + b2_ref[...]
    h = jnp.maximum(h, 0.0).astype(compute_dtype)

    # hidden 3 + ReLU
    h = jnp.dot(h, w3_ref[...], preferred_element_type=jnp.float32) + b3_ref[...]
    h = jnp.maximum(h, 0.0).astype(compute_dtype)

    # fused actor+critic head: single lane-dense 128-wide matmul, unmasked store
    out = jnp.dot(h, wh_ref[...], preferred_element_type=jnp.float32) + bh_ref[...]
    out_ref[...] = out.astype(out_ref.dtype)


# ----------------------------------------------------------------------------
# One-time weight preprocessing (hoisted out of the per-call path).
# ----------------------------------------------------------------------------
def prepare_params(params, *, compute_dtype=jnp.float32):
    """Fuse actor+critic head, cast matmul operands to compute_dtype (biases f32)."""
    action_dim = params["wa"].shape[1]
    h3 = params["w3"].shape[1]
    n_head = _round_up(action_dim + 1, 128)

    wh = jnp.zeros((h3, n_head), jnp.float32)
    wh = wh.at[:, :action_dim].set(params["wa"])
    wh = wh.at[:, action_dim:action_dim + 1].set(params["wc"])
    bh = jnp.zeros((1, n_head), jnp.float32)
    bh = bh.at[:, :action_dim].set(params["ba"])
    bh = bh.at[:, action_dim:action_dim + 1].set(params["bc"])

    return {
        "w1": params["w1"].astype(compute_dtype),
        "w2": params["w2"].astype(compute_dtype),
        "w3": params["w3"].astype(compute_dtype),
        "wh": wh.astype(compute_dtype),
        "b1": params["b1"].astype(jnp.float32),
        "b2": params["b2"].astype(jnp.float32),
        "b3": params["b3"].astype(jnp.float32),
        "bh": bh,
        "action_dim": action_dim,
        "n_head": n_head,
        "compute_dtype": compute_dtype,
    }


# ----------------------------------------------------------------------------
# Forward: batch-tiled pallas_call with VMEM-resident weights.
# ----------------------------------------------------------------------------
def ppo_actor_critic_forward(x, prepared, *, tile_b=None):
    B, input_dim = x.shape
    compute_dtype = prepared["compute_dtype"]
    action_dim = prepared["action_dim"]
    n_head = prepared["n_head"]

    w1, w2, w3, wh = prepared["w1"], prepared["w2"], prepared["w3"], prepared["wh"]
    b1, b2, b3, bh = prepared["b1"], prepared["b2"], prepared["b3"], prepared["bh"]
    h1, h2, h3 = w1.shape[1], w2.shape[1], w3.shape[1]

    # --- batch tiling: big tiles (HBM-streaming bound), but keep >=2 grid
    # steps when the batch allows (shards across v7x's two TensorCores). -----
    cap = 2048 if compute_dtype == jnp.bfloat16 else 1024
    if tile_b is None:
        if B >= 16:
            target = _round_up((B + 1) // 2, 8)   # aim for grid length >= 2
        else:
            target = _round_up(max(B, 1), 8)
        tile_b = max(8, min(cap, target))
    b_pad = _round_up(B, tile_b)

    # Pad the batch axis only (no K padding) and cast x to the compute dtype
    # inside the same copy -> bf16 path halves the streamed x bytes.
    if b_pad == B and x.dtype == compute_dtype:
        xp = x
    else:
        xp = jnp.zeros((b_pad, input_dim), compute_dtype).at[:B, :].set(
            x.astype(compute_dtype))

    grid = (b_pad // tile_b,)

    def resident(shape):
        # whole array, same block every grid step -> stays VMEM-resident
        return pl.BlockSpec(shape, lambda i: (0, 0))

    in_specs = [
        pl.BlockSpec((tile_b, input_dim), lambda i: (i, 0)),  # x tile (streamed)
        resident((input_dim, h1)), resident((1, h1)),
        resident((h1, h2)),        resident((1, h2)),
        resident((h2, h3)),        resident((1, h3)),
        resident((h3, n_head)),    resident((1, n_head)),
    ]
    out_spec = pl.BlockSpec((tile_b, n_head), lambda i: (i, 0))

    cdt_bytes = jnp.dtype(compute_dtype).itemsize
    flops = 2 * b_pad * (input_dim * h1 + h1 * h2 + h2 * h3 + h3 * n_head)
    bytes_accessed = (
        xp.size * cdt_bytes
        + (w1.size + w2.size + w3.size + wh.size) * cdt_bytes
        + (b1.size + b2.size + b3.size + bh.size) * 4
        + b_pad * n_head * 4
    )

    out = pl.pallas_call(
        _ppo_mlp_kernel,
        out_shape=jax.ShapeDtypeStruct((b_pad, n_head), jnp.float32),
        grid=grid,
        in_specs=in_specs,
        out_specs=out_spec,
        compiler_params=pltpu.CompilerParams(
            dimension_semantics=("parallel",),
            vmem_limit_bytes=32 * 1024 * 1024,
        ),
        cost_estimate=pl.CostEstimate(
            flops=flops, transcendentals=0, bytes_accessed=bytes_accessed),
    )(xp, w1, b1, w2, b2, w3, b3, wh, bh)

    out = out[:B]
    action_logits = out[:, :action_dim]
    value = out[:, action_dim:action_dim + 1]
    return action_logits, value


# ----------------------------------------------------------------------------
# Parameter init (mirrors nn.Linear defaults; weights stored [in, out]).
# ----------------------------------------------------------------------------
def init_params(key, input_dim, action_dim, hidden_dims=(256, 128, 128)):
    dims = [input_dim] + list(hidden_dims)
    keys = jax.random.split(key, 2 * len(hidden_dims) + 4)
    params = {}
    ki = 0
    for li in range(len(hidden_dims)):
        fan_in, fan_out = dims[li], dims[li + 1]
        bound = 1.0 / jnp.sqrt(fan_in)
        params[f"w{li + 1}"] = jax.random.uniform(
            keys[ki], (fan_in, fan_out), jnp.float32, -bound, bound); ki += 1
        params[f"b{li + 1}"] = jax.random.uniform(
            keys[ki], (1, fan_out), jnp.float32, -bound, bound); ki += 1
    last = hidden_dims[-1]
    bound = 1.0 / jnp.sqrt(last)
    params["wa"] = jax.random.uniform(
        keys[ki], (last, action_dim), jnp.float32, -bound, bound); ki += 1
    params["ba"] = jax.random.uniform(
        keys[ki], (1, action_dim), jnp.float32, -bound, bound); ki += 1
    params["wc"] = jax.random.uniform(
        keys[ki], (last, 1), jnp.float32, -bound, bound); ki += 1
    params["bc"] = jax.random.uniform(
        keys[ki], (1, 1), jnp.float32, -bound, bound); ki += 1
    return params


def reference_forward(x, params):
    """Pure-JAX reference matching the PyTorch forward."""
    h = x
    for li in range(3):
        h = jnp.maximum(h @ params[f"w{li + 1}"] + params[f"b{li + 1}"], 0.0)
    logits = h @ params["wa"] + params["ba"]
    value = h @ params["wc"] + params["bc"]
    return logits, value


if __name__ == "__main__":
    B = 8             # small demo batch; grid tiles any batch size
    INPUT_DIM = 64
    ACTION_DIM = 16
    HIDDEN = (256, 128, 128)  # module defaults

    key = jax.random.PRNGKey(0)
    kx, kp = jax.random.split(key)
    x = jax.random.normal(kx, (B, INPUT_DIM), jnp.float32)
    params = init_params(kp, INPUT_DIM, ACTION_DIM, HIDDEN)

    ref_logits, ref_value = reference_forward(x, params)

    # --- fp32 compute path (exact vs reference) ---
    prep_f32 = prepare_params(params, compute_dtype=jnp.float32)
    logits, value = ppo_actor_critic_forward(x, prep_f32)
    jax.block_until_ready((logits, value))
    assert logits.shape == (B, ACTION_DIM)
    assert value.shape == (B, 1)
    assert jnp.allclose(logits, ref_logits, atol=1e-4, rtol=1e-4)
    assert jnp.allclose(value, ref_value, atol=1e-4, rtol=1e-4)

    # --- bf16 matmul-operand path (x streamed bf16, f32 accumulate) ---
    prep_bf16 = prepare_params(params, compute_dtype=jnp.bfloat16)
    logits_bf, value_bf = ppo_actor_critic_forward(x, prep_bf16)
    jax.block_until_ready((logits_bf, value_bf))
    assert logits_bf.shape == (B, ACTION_DIM)
    assert value_bf.shape == (B, 1)
    assert bool(jnp.all(jnp.isfinite(logits_bf))) and bool(jnp.all(jnp.isfinite(value_bf)))
    assert jnp.allclose(logits_bf, ref_logits, atol=2e-1, rtol=2e-1)
    assert jnp.allclose(value_bf, ref_value, atol=2e-1, rtol=2e-1)

    print("KERNEL_OK")
</pallas_src>

<mosaic_0001>
module attributes {stable_mosaic.version = 11 : i64} {
  func.func @_ppo_mlp_kernel(%arg0: i32, %arg1: memref<8x64xf32, #tpu.memory_space<vmem>>, %arg2: memref<64x256xf32, #tpu.memory_space<vmem>>, %arg3: memref<1x256xf32, #tpu.memory_space<vmem>>, %arg4: memref<256x128xf32, #tpu.memory_space<vmem>>, %arg5: memref<1x128xf32, #tpu.memory_space<vmem>>, %arg6: memref<128x128xf32, #tpu.memory_space<vmem>>, %arg7: memref<1x128xf32, #tpu.memory_space<vmem>>, %arg8: memref<128x128xf32, #tpu.memory_space<vmem>>, %arg9: memref<1x128xf32, #tpu.memory_space<vmem>>, %arg10: memref<8x128xf32, #tpu.memory_space<vmem>>) attributes {dimension_semantics = [#tpu.dimension_semantics<parallel>], iteration_bounds = array<i64: 1>, scalar_prefetch = 0 : i64, scratch_operands = 0 : i64, tpu.core_type = #tpu.core_type<tc>, window_params = [{transform_indices = @transform_0, window_bounds = array<i64: 8, 64>}, {pipeline_mode = #tpu.pipeline_mode<synchronous>, transform_indices = @transform_1, window_bounds = array<i64: 64, 256>}, {pipeline_mode = #tpu.pipeline_mode<synchronous>, transform_indices = @transform_2, window_bounds = array<i64: 1, 256>}, {pipeline_mode = #tpu.pipeline_mode<synchronous>, transform_indices = @transform_3, window_bounds = array<i64: 256, 128>}, {pipeline_mode = #tpu.pipeline_mode<synchronous>, transform_indices = @transform_4, window_bounds = array<i64: 1, 128>}, {pipeline_mode = #tpu.pipeline_mode<synchronous>, transform_indices = @transform_5, window_bounds = array<i64: 128, 128>}, {pipeline_mode = #tpu.pipeline_mode<synchronous>, transform_indices = @transform_6, window_bounds = array<i64: 1, 128>}, {pipeline_mode = #tpu.pipeline_mode<synchronous>, transform_indices = @transform_7, window_bounds = array<i64: 128, 128>}, {pipeline_mode = #tpu.pipeline_mode<synchronous>, transform_indices = @transform_8, window_bounds = array<i64: 1, 128>}, {transform_indices = @transform_9, window_bounds = array<i64: 8, 128>}]} {
    %c0 = arith.constant 0 : index
    %c0_0 = arith.constant 0 : index
    %0 = vector.load %arg1[%c0, %c0_0] : memref<8x64xf32, #tpu.memory_space<vmem>>, vector<8x64xf32>
    %c0_1 = arith.constant 0 : index
    %c0_2 = arith.constant 0 : index
    %1 = vector.load %arg2[%c0_1, %c0_2] : memref<64x256xf32, #tpu.memory_space<vmem>>, vector<64x256xf32>
    %cst = arith.constant dense<0.000000e+00> : vector<8x256xf32>
    %2 = tpu.matmul %0, %1, %cst {dimension_numbers = #tpu.dot_dimension_numbers<[1], [0], [0], [1], [0, 0, 1, 1], [], []>} : vector<8x64xf32>, vector<64x256xf32>, vector<8x256xf32> -> vector<8x256xf32>
    %c0_3 = arith.constant 0 : index
    %c0_4 = arith.constant 0 : index
    %3 = vector.load %arg3[%c0_3, %c0_4] : memref<1x256xf32, #tpu.memory_space<vmem>>, vector<1x256xf32>
    %4 = vector.broadcast %3 : vector<1x256xf32> to vector<8x256xf32>
    %5 = arith.addf %2, %4 : vector<8x256xf32>
    %cst_5 = arith.constant 0.000000e+00 : f32
    %6 = vector.broadcast %cst_5 : f32 to vector<8x256xf32>
    %7 = arith.maximumf %5, %6 : vector<8x256xf32>
    %c0_6 = arith.constant 0 : index
    %c0_7 = arith.constant 0 : index
    %8 = vector.load %arg4[%c0_6, %c0_7] : memref<256x128xf32, #tpu.memory_space<vmem>>, vector<256x128xf32>
    %cst_8 = arith.constant dense<0.000000e+00> : vector<8x128xf32>
    %9 = tpu.matmul %7, %8, %cst_8 {dimension_numbers = #tpu.dot_dimension_numbers<[1], [0], [0], [1], [0, 0, 1, 1], [], []>} : vector<8x256xf32>, vector<256x128xf32>, vector<8x128xf32> -> vector<8x128xf32>
    %c0_9 = arith.constant 0 : index
    %c0_10 = arith.constant 0 : index
    %10 = vector.load %arg5[%c0_9, %c0_10] : memref<1x128xf32, #tpu.memory_space<vmem>>, vector<1x128xf32>
    %11 = vector.broadcast %10 : vector<1x128xf32> to vector<8x128xf32>
    %12 = arith.addf %9, %11 : vector<8x128xf32>
    %cst_11 = arith.constant 0.000000e+00 : f32
    %13 = vector.broadcast %cst_11 : f32 to vector<8x128xf32>
    %14 = arith.maximumf %12, %13 : vector<8x128xf32>
    %c0_12 = arith.constant 0 : index
    %c0_13 = arith.constant 0 : index
    %15 = vector.load %arg6[%c0_12, %c0_13] : memref<128x128xf32, #tpu.memory_space<vmem>>, vector<128x128xf32>
    %cst_14 = arith.constant dense<0.000000e+00> : vector<8x128xf32>
    %16 = tpu.matmul %14, %15, %cst_14 {dimension_numbers = #tpu.dot_dimension_numbers<[1], [0], [0], [1], [0, 0, 1, 1], [], []>} : vector<8x128xf32>, vector<128x128xf32>, vector<8x128xf32> -> vector<8x128xf32>
    %c0_15 = arith.constant 0 : index
    %c0_16 = arith.constant 0 : index
    %17 = vector.load %arg7[%c0_15, %c0_16] : memref<1x128xf32, #tpu.memory_space<vmem>>, vector<1x128xf32>
    %18 = vector.broadcast %17 : vector<1x128xf32> to vector<8x128xf32>
    %19 = arith.addf %16, %18 : vector<8x128xf32>
    %cst_17 = arith.constant 0.000000e+00 : f32
    %20 = vector.broadcast %cst_17 : f32 to vector<8x128xf32>
    %21 = arith.maximumf %19, %20 : vector<8x128xf32>
    %c0_18 = arith.constant 0 : index
    %c0_19 = arith.constant 0 : index
    %22 = vector.load %arg8[%c0_18, %c0_19] : memref<128x128xf32, #tpu.memory_space<vmem>>, vector<128x128xf32>
    %cst_20 = arith.constant dense<0.000000e+00> : vector<8x128xf32>
    %23 = tpu.matmul %21, %22, %cst_20 {dimension_numbers = #tpu.dot_dimension_numbers<[1], [0], [0], [1], [0, 0, 1, 1], [], []>} : vector<8x128xf32>, vector<128x128xf32>, vector<8x128xf32> -> vector<8x128xf32>
    %c0_21 = arith.constant 0 : index
    %c0_22 = arith.constant 0 : index
    %24 = vector.load %arg9[%c0_21, %c0_22] : memref<1x128xf32, #tpu.memory_space<vmem>>, vector<1x128xf32>
    %25 = vector.broadcast %24 : vector<1x128xf32> to vector<8x128xf32>
    %26 = arith.addf %23, %25 : vector<8x128xf32>
    %c0_23 = arith.constant 0 : index
    %c0_24 = arith.constant 0 : index
    %27 = vector.load %arg10[%c0_23, %c0_24] : memref<8x128xf32, #tpu.memory_space<vmem>>, vector<8x128xf32>
    tpu.vector_store %arg10[%c0_23, %c0_24], %26 {strides = array<i32>} : memref<8x128xf32, #tpu.memory_space<vmem>>, vector<8x128xf32>,
    return
  }
  func.func @transform_0(%arg0: i32) -> (i32, i32) {
    %c0_i32 = arith.constant 0 : i32
    %c0_i32_0 = arith.constant 0 : i32
    return %arg0, %c0_i32 : i32, i32
  }
  func.func @transform_1(%arg0: i32) -> (i32, i32) {
    %c0_i32 = arith.constant 0 : i32
    %c0_i32_0 = arith.constant 0 : i32
    %c0_i32_1 = arith.constant 0 : i32
    return %c0_i32, %c0_i32_0 : i32, i32
  }
  func.func @transform_2(%arg0: i32) -> (i32, i32) {
    %c0_i32 = arith.constant 0 : i32
    %c0_i32_0 = arith.constant 0 : i32
    %c0_i32_1 = arith.constant 0 : i32
    return %c0_i32, %c0_i32_0 : i32, i32
  }
  func.func @transform_3(%arg0: i32) -> (i32, i32) {
    %c0_i32 = arith.constant 0 : i32
    %c0_i32_0 = arith.constant 0 : i32
    %c0_i32_1 = arith.constant 0 : i32
    return %c0_i32, %c0_i32_0 : i32, i32
  }
  func.func @transform_4(%arg0: i32) -> (i32, i32) {
    %c0_i32 = arith.constant 0 : i32
    %c0_i32_0 = arith.constant 0 : i32
    %c0_i32_1 = arith.constant 0 : i32
    return %c0_i32, %c0_i32_0 : i32, i32
  }
  func.func @transform_5(%arg0: i32) -> (i32, i32) {
    %c0_i32 = arith.constant 0 : i32
    %c0_i32_0 = arith.constant 0 : i32
    %c0_i32_1 = arith.constant 0 : i32
    return %c0_i32, %c0_i32_0 : i32, i32
  }
  func.func @transform_6(%arg0: i32) -> (i32, i32) {
    %c0_i32 = arith.constant 0 : i32
    %c0_i32_0 = arith.constant 0 : i32
    %c0_i32_1 = arith.constant 0 : i32
    return %c0_i32, %c0_i32_0 : i32, i32
  }
  func.func @transform_7(%arg0: i32) -> (i32, i32) {
    %c0_i32 = arith.constant 0 : i32
    %c0_i32_0 = arith.constant 0 : i32
    %c0_i32_1 = arith.constant 0 : i32
    return %c0_i32, %c0_i32_0 : i32, i32
  }
  func.func @transform_8(%arg0: i32) -> (i32, i32) {
    %c0_i32 = arith.constant 0 : i32
    %c0_i32_0 = arith.constant 0 : i32
    %c0_i32_1 = arith.constant 0 : i32
    return %c0_i32, %c0_i32_0 : i32, i32
  }
  func.func @transform_9(%arg0: i32) -> (i32, i32) {
    %c0_i32 = arith.constant 0 : i32
    %c0_i32_0 = arith.constant 0 : i32
    return %arg0, %c0_i32 : i32, i32
  }
}

</mosaic_0001>

<bundles_post_ra>
// kernel: tpu_custom_call.1
= control target key start
LH: loop header
LB: loop body
LE: loop exit
PB: predicated region body
PF: predicated region fallthrough
CT: control target
= control target key end

     0   :  { %14 = vsyncpa [#allocation3], 0  ;;  %s939_s0 = inlined_call_operand.hbm [shape: f32[8,64], index: 0, kind: input, shape index: {}]   ;;  %s940_s1 = inlined_call_operand.hbm [shape: f32[64,256], index: 1, kind: input, shape index: {}]   ;;  %s941_s2 = inlined_call_operand.vmem [shape: f32[1,256], index: 2, kind: input, shape index: {}]   ;;  %s942_s3 = inlined_call_operand.hbm [shape: f32[256,128], index: 3, kind: input, shape index: {}]   ;;  %s943_s4 = inlined_call_operand.vmem [shape: f32[1,128], index: 4, kind: input, shape index: {}]   ;;  %s944_s5 = inlined_call_operand.hbm [shape: f32[128,128], index: 5, kind: input, shape index: {}]   ;;  %s945_s6 = inlined_call_operand.vmem [shape: f32[1,128], index: 6, kind: input, shape index: {}]   ;;  %s946_s7 = inlined_call_operand.hbm [shape: f32[128,128], index: 7, kind: input, shape index: {}]   ;;  %s947_s8 = inlined_call_operand.vmem [shape: f32[1,128], index: 8, kind: input, shape index: {}]   ;;  %s948_s9 = inlined_call_operand.hbm [shape: f32[8,128], index: 9, kind: output, shape index: {}]  }
   0x1   :  { %15 = vsyncpa [#allocation6], 0 }
   0x2   :  { %16 = vsyncpa [#allocation9], 0 }
   0x3   :  { %17 = vsyncpa [#allocation4], 0  ;;  %s803_s30 = smov [#allocation5]  }
   0x4   :  { %s33_s10 = sshll.u32 %s803_s30, 4  ;;  %s34_s10 = int_to_ptr.vmem [resolvable:$true] %s33_s10 }
   0x5   :  { %s683_s11 = scalar_lea.vmem %s34_s10, 2048  ;;  %p688_p1 = scmp.lt.s32.totalorder %s34_s10, %s34_s10 }
   0x6   :  { %p684_p0 = scmp.ne.s32.totalorder %s34_s10, %s683_s11  ;;  %p689_p2 = scmp.lt.s32.totalorder %s683_s11, %s683_s11 }
   0x8   :  { %p690_p3 = por %p689_p2, %p688_p1 }
   0xa   :  { %p691_p4 = pnand %p690_p3, %p684_p0 }
   0xc   :  { %694 = shalt.err (!%p691_p4)
}
   0xd   :  { %s804_s12 = smov 256   ;;  %s805_s13 = smov 16  }
   0xe   :  { %39 = dma.hbm_to_vmem [thread:$0]  %s940_s1, 2048, %s34_s10, [#allocation6], %s804_s12, %s804_s12, %s805_s13  }
   0xf   :  { %s806_s16 = smov [#allocation8]   ;;  %s807_s18 = smov [#allocation2]  }
  0x10   :  { %s61_s17 = sshll.u32 %s806_s16, 4  ;;  %s24_s19 = sshll.u32 %s807_s18, 4  ;;  %s62_s17 = int_to_ptr.vmem [resolvable:$true] %s61_s17  ;;  %s25_s19 = int_to_ptr.vmem [resolvable:$true] %s24_s19 }
  0x11   :  { %s703_s20 = scalar_lea.vmem %s62_s17, 2048  ;;  %p708_p6 = scmp.lt.s32.totalorder %s62_s17, %s62_s17 }
  0x12   :  { %p704_p5 = scmp.ne.s32.totalorder %s62_s17, %s703_s20  ;;  %p709_p7 = scmp.lt.s32.totalorder %s703_s20, %s703_s20 }
  0x14   :  { %p710_p8 = por %p709_p7, %p708_p6 }
  0x16   :  { %p711_p9 = pnand %p710_p8, %p704_p5 }
  0x18   :  { %714 = shalt.err (!%p711_p9)
}
  0x19   :  { %s808_s21 = smov 128   ;;  %s809_s22 = smov 8  }
  0x1a   :  { %67 = dma.hbm_to_vmem [thread:$0]  %s944_s5, 2048, %s62_s17, [#allocation9], %s808_s21, %s808_s21, %s809_s22  }
  0x1b   :  { %s723_s1 = scalar_lea.vmem %s25_s19, 128  ;;  %p728_p11 = scmp.lt.s32.totalorder %s25_s19, %s25_s19 }
  0x1c   :  { %p724_p10 = scmp.ne.s32.totalorder %s25_s19, %s723_s1  ;;  %p729_p12 = scmp.lt.s32.totalorder %s723_s1, %s723_s1 }
  0x1e   :  { %p730_p13 = por %p729_p12, %p728_p11 }
  0x20   :  { %p731_p0 = pnand %p730_p13, %p724_p10 }
  0x22   :  { %734 = shalt.err (!%p731_p0)
}
  0x23   :  { %27 = dma.hbm_to_vmem [thread:$0]  %s939_s0, 128, %s25_s19, [#allocation3]  }
  0x24   :  { %s810_s27 = smov [#allocation7]   ;;  %s811_s29 = smov [#allocation10]  }
  0x25   :  { %s47_s28 = sshll.u32 %s810_s27, 4  ;;  %s75_s30 = sshll.u32 %s811_s29, 4  ;;  %s48_s28 = int_to_ptr.vmem [resolvable:$true] %s47_s28  ;;  %s76_s30 = int_to_ptr.vmem [resolvable:$true] %s75_s30 }
  0x26   :  { %s743_s10 = scalar_lea.vmem %s48_s28, 4096  ;;  %p748_p2 = scmp.lt.s32.totalorder %s48_s28, %s48_s28 }
  0x27   :  { %p744_p1 = scmp.ne.s32.totalorder %s48_s28, %s743_s10  ;;  %p749_p3 = scmp.lt.s32.totalorder %s743_s10, %s743_s10 }
  0x29   :  { %p750_p4 = por %p749_p3, %p748_p2 }
  0x2b   :  { %p751_p5 = pnand %p750_p4, %p744_p1 }
  0x2d   :  { %754 = shalt.err (!%p751_p5)
}
  0x2e   :  { %53 = dma.hbm_to_vmem [thread:$0]  %s942_s3, 4096, %s48_s28, [#allocation6], %s808_s21, %s808_s21, %s809_s22  }
  0x2f   :  { %s763_s0 = scalar_lea.vmem %s76_s30, 2048  ;;  %p768_p7 = scmp.lt.s32.totalorder %s76_s30, %s76_s30 }
  0x30   :  { %p764_p6 = scmp.ne.s32.totalorder %s76_s30, %s763_s0  ;;  %p769_p8 = scmp.lt.s32.totalorder %s763_s0, %s763_s0 }
  0x32   :  { %p770_p9 = por %p769_p8, %p768_p7 }
  0x34   :  { %p771_p10 = pnand %p770_p9, %p764_p6 }
  0x36   :  { %774 = shalt.err (!%p771_p10)
}
  0x37   :  { %81 = dma.hbm_to_vmem [thread:$0]  %s946_s7, 2048, %s76_s30, [#allocation9], %s808_s21, %s808_s21, %s809_s22  }
  0x38   :  { %795 = dma.done.wait [#allocation3], 128  }
  0x39   :  { %796 = vsyncadd [#allocation3], 4294967168 }
  0x3a   :  { %797 = dma.done.wait [#allocation6], 6144  }
  0x3b   :  { %798 = vsyncadd [#allocation6], 4294961152 }
  0x3c   :  { %799 = dma.done.wait [#allocation9], 4096  }
  0x3d   :  { %800 = vsyncadd [#allocation9], 4294963200  ;;  %v812_v0 = vmov 0.0   ;;  %v115_v1 = vld [vmem:[#allocation5 + $0x78] sm:$0xff]  ;;  %v114_v2 = vld [vmem:[#allocation5 + $0x70] sm:$0xff]  ;;  %vm128_vm0 = vcmask 523264   ;;  %v118_v61 = vlaneseq }
  0x3e   :  { %196 = vmatprep.mubr.f32.mxu0 %v812_v0  ;;  %v113_v3 = vld [vmem:[#allocation5 + $0x68] sm:$0xff]  ;;  %148 = vmatprep.subr.mxu0 %v115_v1  ;;  %v112_v4 = vld [vmem:[#allocation5 + $0x60] sm:$0xff]  ;;  %v111_v5 = vld [vmem:[#allocation5 + $0x58] sm:$0xff]  ;;  %vm813_vm1 = vmmov 0   ;;  %s814_s18 = smov [#allocation11]  }
  0x3f   :  { %149 = vmatpush1.msra.mxu0 %v114_v2  ;;  %v110_v6 = vld [vmem:[#allocation5 + $0x50] sm:$0xff]  ;;  %v109_v7 = vld [vmem:[#allocation5 + $0x48] sm:$0xff]  ;;  %v108_v8 = vld [vmem:[#allocation5 + $0x40] sm:$0xff]  ;;  %v119_v62 = vshrl.u32 %v118_v61, 7  ;;  %s509_s19 = sshll.u32 %s814_s18, 4  ;;  %s510_s19 = int_to_ptr.vmem [resolvable:$true] %s509_s19 }
  0x40   :  { %150 = vmatprep.subr.mxu0 %v113_v3  ;;  %v107_v9 = vld [vmem:[#allocation5 + $0x38] sm:$0xff]  ;;  %v235_v12 = vld [vmem:[#allocation7 + $0xf0] sm:$0xff]  ;;  %v234_v15 = vld [vmem:[#allocation7 + $0xe8] sm:$0xff]  ;;  %s775_s20 = scalar_lea.vmem %s510_s19, 128  ;;  %p780_p12 = scmp.lt.s32.totalorder %s510_s19, %s510_s19 }
  0x41   :  { %151 = vmatpush1.msra.mxu0 %v112_v4  ;;  %v236_v10 = vld [vmem:[#allocation7 + $0xf8] sm:$0xff]  ;;  %v219_v13 = vld [vmem:[#allocation7 + $0x70] sm:$0xff]  ;;  %v105_v16 = vld [vmem:[#allocation5 + $0x28] sm:$0xff]  ;;  %v120_v63 = vsub.s32 0, %v119_v62  ;;  %v124_v2 = vsub.s32 1, %v119_v62  ;;  %p776_p11 = scmp.ne.s32.totalorder %s510_s19, %s775_s20  ;;  %p781_p13 = scmp.lt.s32.totalorder %s775_s20, %s775_s20 }
  0x42   :  { %152 = vmatprep.subr.mxu0 %v111_v5  ;;  %524 = vmatprep.subr.mxu1 %v236_v10  ;;  %v220_v11 = vld [vmem:[#allocation7 + $0x78] sm:$0xff]  ;;  %v106_v14 = vld [vmem:[#allocation5 + $0x30] sm:$0xff]  ;;  %v218_v17 = vld [vmem:[#allocation7 + $0x68] sm:$0xff] }
  0x43   :  { %153 = vmatpush1.msra.mxu0 %v110_v6  ;;  %525 = vmatpush3.msra.mxu1 %v220_v11  ;;  %v104_v18 = vld [vmem:[#allocation5 + $0x20] sm:$0xff]  ;;  %v103_v20 = vld [vmem:[#allocation5 + $0x18] sm:$0xff]  ;;  %v102_v22 = vld [vmem:[#allocation5 + $0x10] sm:$0xff]  ;;  %p782_p0 = por %p781_p13, %p780_p12 }
  0x44   :  { %154 = vmatprep.subr.mxu0 %v109_v7  ;;  %526 = vmatprep.subr.mxu1 %v235_v12  ;;  %v233_v19 = vld [vmem:[#allocation7 + $0xe0] sm:$0xff]  ;;  %v232_v23 = vld [vmem:[#allocation7 + $0xd8] sm:$0xff]  ;;  %v101_v24 = vld [vmem:[#allocation5 + $0x8] sm:$0xff] }
  0x45   :  { %155 = vmatpush1.msra.mxu0 %v108_v8  ;;  %527 = vmatpush3.msra.mxu1 %v219_v13  ;;  %v217_v21 = vld [vmem:[#allocation7 + $0x60] sm:$0xff]  ;;  %v216_v25 = vld [vmem:[#allocation7 + $0x58] sm:$0xff]  ;;  %v231_v27 = vld [vmem:[#allocation7 + $0xd0] sm:$0xff]  ;;  %p783_p1 = pnand %p782_p0, %p776_p11 }
  0x46   :  { %156 = vmatprep.subr.mxu0 %v107_v9  ;;  %528 = vmatprep.subr.mxu1 %v234_v15  ;;  %v100_v26 = vld [vmem:[#allocation5] sm:$0xff]  ;;  %v99_v28 = vld [vmem:[#allocation2] sm:$0xff]  ;;  %v215_v29 = vld [vmem:[#allocation7 + $0x50] sm:$0xff] }
  0x47   :  { %157 = vmatpush1.msra.mxu0 %v106_v14  ;;  %529 = vmatpush3.msra.mxu1 %v218_v17  ;;  %v230_v30 = vld [vmem:[#allocation7 + $0xc8] sm:$0xff]  ;;  %v229_v32 = vld [vmem:[#allocation7 + $0xc0] sm:$0xff]  ;;  %v228_v34 = vld [vmem:[#allocation7 + $0xb8] sm:$0xff] }
  0x48   :  { %158 = vmatprep.subr.mxu0 %v105_v16  ;;  %530 = vmatprep.subr.mxu1 %v233_v19  ;;  %v214_v31 = vld [vmem:[#allocation7 + $0x48] sm:$0xff]  ;;  %v213_v33 = vld [vmem:[#allocation7 + $0x40] sm:$0xff]  ;;  %v212_v35 = vld [vmem:[#allocation7 + $0x38] sm:$0xff] }
  0x49   :  { %159 = vmatpush1.msra.mxu0 %v104_v18  ;;  %531 = vmatpush3.msra.mxu1 %v217_v21  ;;  %v227_v36 = vld [vmem:[#allocation7 + $0xb0] sm:$0xff]  ;;  %v226_v38 = vld [vmem:[#allocation7 + $0xa8] sm:$0xff]  ;;  %v225_v40 = vld [vmem:[#allocation7 + $0xa0] sm:$0xff] }
  0x4a   :  { %160 = vmatprep.subr.mxu0 %v103_v20  ;;  %532 = vmatprep.subr.mxu1 %v232_v23  ;;  %v211_v37 = vld [vmem:[#allocation7 + $0x30] sm:$0xff]  ;;  %v210_v39 = vld [vmem:[#allocation7 + $0x28] sm:$0xff]  ;;  %v209_v41 = vld [vmem:[#allocation7 + $0x20] sm:$0xff] }
  0x4b   :  { %161 = vmatpush1.msra.mxu0 %v102_v22  ;;  %533 = vmatpush3.msra.mxu1 %v216_v25  ;;  %v224_v42 = vld [vmem:[#allocation7 + $0x98] sm:$0xff]  ;;  %v223_v44 = vld [vmem:[#allocation7 + $0x90] sm:$0xff]  ;;  %v222_v46 = vld [vmem:[#allocation7 + $0x88] sm:$0xff] }
  0x4c   :  { %162 = vmatprep.subr.mxu0 %v101_v24  ;;  %534 = vmatprep.subr.mxu1 %v231_v27  ;;  %v208_v43 = vld [vmem:[#allocation7 + $0x18] sm:$0xff]  ;;  %v207_v45 = vld [vmem:[#allocation7 + $0x10] sm:$0xff]  ;;  %v206_v47 = vld [vmem:[#allocation7 + $0x8] sm:$0xff] }
  0x4d   :  { %163 = vmatpush1.msra.mxu0 %v100_v26  ;;  %535 = vmatpush3.msra.mxu1 %v215_v29  ;;  %v221_v48 = vld [vmem:[#allocation7 + $0x80] sm:$0xff]  ;;  %v330_v50 = vld [vmem:[#allocation8 + $0x78] sm:$0xff]  ;;  %v329_v51 = vld [vmem:[#allocation8 + $0x70] sm:$0xff] }
  0x4e   :  { %520 = vmatmul.mubr.msk.f32.vlgmr.msra.gmra.mxu0 %vm128_vm0, %v99_v28  ;;  %536 = vmatprep.subr.mxu1 %v230_v30  ;;  %v205_v49 = vld [vmem:[#allocation7] sm:$0xff]  ;;  %v328_v52 = vld [vmem:[#allocation8 + $0x68] sm:$0xff]  ;;  %v326_v54 = vld [vmem:[#allocation8 + $0x58] sm:$0xff] }
  0x4f   :  { %593 = vmatprep.subr.mxu0 %v812_v0  ;;  %537 = vmatpush3.msra.mxu1 %v214_v31  ;;  %v327_v53 = vld [vmem:[#allocation8 + $0x60] sm:$0xff]  ;;  %v325_v55 = vld [vmem:[#allocation8 + $0x50] sm:$0xff]  ;;  %v324_v56 = vld [vmem:[#allocation8 + $0x48] sm:$0xff] }
  0x50   :  { %538 = vmatprep.subr.mxu1 %v229_v32  ;;  %594 = vmatpush3.msra.mxu0 %v330_v50  ;;  %v323_v57 = vld [vmem:[#allocation8 + $0x40] sm:$0xff]  ;;  %v322_v58 = vld [vmem:[#allocation8 + $0x38] sm:$0xff]  ;;  %v321_v59 = vld [vmem:[#allocation8 + $0x30] sm:$0xff] }
  0x51   :  { %539 = vmatpush3.msra.mxu1 %v213_v33  ;;  %595 = vmatprep.subr.mxu0 %v812_v0  ;;  %v320_v60 = vld [vmem:[#allocation8 + $0x28] sm:$0xff]  ;;  %v116_v1 = vld [vmem:[%s941_s2] sm:$0x3]  ;;  %v319_v11 = vld [vmem:[#allocation8 + $0x20] sm:$0xff] }
  0x52   :  { %540 = vmatprep.subr.mxu1 %v228_v34  ;;  %596 = vmatpush3.msra.mxu0 %v329_v51  ;;  %v121_v3 = vrot.slane %v116_v1, %v120_v63  ;;  %v125_v4 = vrot.slane %v116_v1, %v124_v2  ;;  %v318_v12 = vld [vmem:[#allocation8 + $0x18] sm:$0xff]  ;;  %v317_v13 = vld [vmem:[#allocation8 + $0x10] sm:$0xff]  ;;  %v316_v14 = vld [vmem:[#allocation8 + $0x8] sm:$0xff] }
  0x53   :  { %541 = vmatpush3.msra.mxu1 %v212_v35  ;;  %597 = vmatprep.subr.mxu0 %v812_v0  ;;  %v315_v15 = vld [vmem:[#allocation8] sm:$0xff]  ;;  %v424_v16 = vld [vmem:[#allocation10 + $0x78] sm:$0xff]  ;;  %v423_v17 = vld [vmem:[#allocation10 + $0x70] sm:$0xff] }
  0x54   :  { %542 = vmatprep.subr.mxu1 %v227_v36  ;;  %598 = vmatpush3.msra.mxu0 %v328_v52  ;;  %v422_v18 = vld [vmem:[#allocation10 + $0x68] sm:$0xff]  ;;  %v421_v19 = vld [vmem:[#allocation10 + $0x60] sm:$0xff]  ;;  %v420_v20 = vld [vmem:[#allocation10 + $0x58] sm:$0xff] }
  0x55   :  { %543 = vmatpush3.msra.mxu1 %v211_v37  ;;  %599 = vmatprep.subr.mxu0 %v812_v0  ;;  %v419_v21 = vld [vmem:[#allocation10 + $0x50] sm:$0xff]  ;;  %v418_v22 = vld [vmem:[#allocation10 + $0x48] sm:$0xff]  ;;  %v417_v23 = vld [vmem:[#allocation10 + $0x40] sm:$0xff] }
  0x56   :  { %544 = vmatprep.subr.mxu1 %v226_v38  ;;  %600 = vmatpush3.msra.mxu0 %v327_v53  ;;  %v416_v24 = vld [vmem:[#allocation10 + $0x38] sm:$0xff]  ;;  %v415_v25 = vld [vmem:[#allocation10 + $0x30] sm:$0xff]  ;;  %v414_v26 = vld [vmem:[#allocation10 + $0x28] sm:$0xff] }
  0x57   :  { %545 = vmatpush3.msra.mxu1 %v210_v39  ;;  %601 = vmatprep.subr.mxu0 %v812_v0  ;;  %v413_v27 = vld [vmem:[#allocation10 + $0x20] sm:$0xff]  ;;  %v412_v28 = vld [vmem:[#allocation10 + $0x18] sm:$0xff]  ;;  %v411_v35 = vld [vmem:[#allocation10 + $0x10] sm:$0xff] }
  0x58   :  { %546 = vmatprep.subr.mxu1 %v225_v40  ;;  %602 = vmatpush3.msra.mxu0 %v326_v54  ;;  %v521_v30 = vld [vmem:[%s943_s4] ss:$0 sm:$0xff]  ;;  %v410_v36 = vld [vmem:[#allocation10 + $0x8] sm:$0xff]  ;;  %v409_v37 = vld [vmem:[#allocation10] sm:$0xff] }
  0x59   :  { %547 = vmatpush3.msra.mxu1 %v209_v41  ;;  %603 = vmatprep.subr.mxu0 %v812_v0  ;;  %v522_v38 = vld [vmem:[%s945_s6] ss:$0 sm:$0xff] }
  0x5a   :  { %548 = vmatprep.subr.mxu1 %v224_v42  ;;  %604 = vmatpush3.msra.mxu0 %v325_v55 }
  0x5b   :  { %549 = vmatpush3.msra.mxu1 %v208_v43  ;;  %605 = vmatprep.subr.mxu0 %v812_v0  ;;  %v523_v43 = vld [vmem:[%s947_s8] ss:$0 sm:$0xff] }
  0x5c   :  { %550 = vmatprep.subr.mxu1 %v223_v44  ;;  %606 = vmatpush3.msra.mxu0 %v324_v56 }
  0x5d   :  { %551 = vmatpush3.msra.mxu1 %v207_v45  ;;  %607 = vmatprep.subr.mxu0 %v812_v0 }
  0x5e   :  { %552 = vmatprep.subr.mxu1 %v222_v46  ;;  %608 = vmatpush3.msra.mxu0 %v323_v57 }
  0x5f   :  { %553 = vmatpush3.msra.mxu1 %v206_v47  ;;  %609 = vmatprep.subr.mxu0 %v812_v0 }
  0x60   :  { %554 = vmatprep.subr.mxu1 %v221_v48  ;;  %610 = vmatpush3.msra.mxu0 %v322_v58 }
  0x61   :  { %555 = vmatpush3.msra.mxu1 %v205_v49  ;;  %611 = vmatprep.subr.mxu0 %v812_v0 }
  0x62   :  { %628 = vmatprep.subr.mxu1 %v812_v0  ;;  %612 = vmatpush3.msra.mxu0 %v321_v59 }
  0x63   :  { %613 = vmatprep.subr.mxu0 %v812_v0  ;;  %625 = vmatprep.mubr.msk.f32.mxu0 %vm813_vm1, %v812_v0 }
  0x64   :  { %614 = vmatpush3.msra.mxu0 %v320_v60 }
  0x65   :  { %615 = vmatprep.subr.mxu0 %v812_v0 }
  0x66   :  { %616 = vmatpush3.msra.mxu0 %v319_v11 }
  0x67   :  { %617 = vmatprep.subr.mxu0 %v812_v0 }
  0x68   :  { %618 = vmatpush3.msra.mxu0 %v318_v12 }
  0x69   :  { %619 = vmatprep.subr.mxu0 %v812_v0 }
  0x6a   :  { %620 = vmatpush3.msra.mxu0 %v317_v13 }
  0x6b   :  { %621 = vmatprep.subr.mxu0 %v812_v0 }
  0x6c   :  { %622 = vmatpush3.msra.mxu0 %v316_v14 }
  0x6d   :  { %623 = vmatprep.subr.mxu0 %v812_v0 }
  0x6e   :  { %624 = vmatpush3.msra.mxu0 %v315_v15 }
 0x10e   :  { %v198_v5 = vpop.f32.mrf.mxu0 }
 0x10f   :  { %v199_v6 = vadd.f32 %v198_v5, %v121_v3 }
 0x110   :  { %v200_v7 = vpop.f32.mrf.mxu0 }
 0x111   :  { %v201_v8 = vadd.f32 %v200_v7, %v125_v4  ;;  %v203_v10 = vmax.f32 %v199_v6, 0.0 }
 0x113   :  { %v204_v9 = vmax.f32 %v201_v8, 0.0 }
 0x115   :  { %308 = vmatprep.mubr.f32.mxu1 %v204_v9 }
 0x116   :  { %309 = vmatmul.mubr.f32.vlgmr.msra.gmra.mxu1 %v203_v10 }
 0x117   :  { %660 = vmatprep.mubr.msk.f32.mxu1 %vm813_vm1, %v812_v0  ;;  %629 = vmatpush3.msra.mxu1 %v424_v16 }
 0x118   :  { %630 = vmatprep.subr.mxu1 %v812_v0 }
 0x119   :  { %631 = vmatpush3.msra.mxu1 %v423_v17 }
 0x11a   :  { %632 = vmatprep.subr.mxu1 %v812_v0 }
 0x11b   :  { %633 = vmatpush3.msra.mxu1 %v422_v18 }
 0x11c   :  { %634 = vmatprep.subr.mxu1 %v812_v0 }
 0x11d   :  { %635 = vmatpush3.msra.mxu1 %v421_v19 }
 0x11e   :  { %636 = vmatprep.subr.mxu1 %v812_v0 }
 0x11f   :  { %637 = vmatpush3.msra.mxu1 %v420_v20 }
 0x120   :  { %638 = vmatprep.subr.mxu1 %v812_v0 }
 0x121   :  { %639 = vmatpush3.msra.mxu1 %v419_v21 }
 0x122   :  { %640 = vmatprep.subr.mxu1 %v812_v0 }
 0x123   :  { %641 = vmatpush3.msra.mxu1 %v418_v22 }
 0x124   :  { %642 = vmatprep.subr.mxu1 %v812_v0 }
 0x125   :  { %643 = vmatpush3.msra.mxu1 %v417_v23 }
 0x126   :  { %644 = vmatprep.subr.mxu1 %v812_v0 }
 0x127   :  { %645 = vmatpush3.msra.mxu1 %v416_v24 }
 0x128   :  { %646 = vmatprep.subr.mxu1 %v812_v0 }
 0x129   :  { %647 = vmatpush3.msra.mxu1 %v415_v25 }
 0x12a   :  { %648 = vmatprep.subr.mxu1 %v812_v0 }
 0x12b   :  { %649 = vmatpush3.msra.mxu1 %v414_v26 }
 0x12c   :  { %650 = vmatprep.subr.mxu1 %v812_v0 }
 0x12d   :  { %651 = vmatpush3.msra.mxu1 %v413_v27 }
 0x12e   :  { %652 = vmatprep.subr.mxu1 %v812_v0 }
 0x12f   :  { %653 = vmatpush3.msra.mxu1 %v412_v28 }
 0x130   :  { %654 = vmatprep.subr.mxu1 %v812_v0 }
 0x131   :  { %655 = vmatpush3.msra.mxu1 %v411_v35 }
 0x132   :  { %656 = vmatprep.subr.mxu1 %v812_v0 }
 0x133   :  { %657 = vmatpush3.msra.mxu1 %v410_v36 }
 0x134   :  { %658 = vmatprep.subr.mxu1 %v812_v0 }
 0x135   :  { %659 = vmatpush3.msra.mxu1 %v409_v37 }
 0x1d6   :  { %v556_v29 = vpop.f32.mrf.mxu1 }
 0x1d8   :  { %v557_v31 = vpop.f32.mrf.mxu1 }
 0x1d9   :  { %v558_v32 = vadd.f32 %v557_v31, %v556_v29 }
 0x1db   :  { %v311_v33 = vadd.f32 %v558_v32, %v521_v30 }
 0x1dd   :  { %v314_v34 = vmax.f32 %v311_v33, 0.0 }
 0x1df   :  { %626 = vmatmul.mubr.f32.vlgmr.msra.gmra.mxu0 %v314_v34 }
 0x29f   :  { %v404_v39 = vpop.f32.mrf.mxu0 }
 0x2a0   :  { %v405_v40 = vadd.f32 %v522_v38, %v404_v39 }
 0x2a1   :  { %v627_v41 = vpop.f32.mrf.mxu0 }
 0x2a2   :  { %v408_v42 = vmax.f32 %v405_v40, 0.0 }
 0x2a4   :  { %661 = vmatmul.mubr.f32.vlgmr.msra.gmra.mxu1 %v408_v42 }
 0x364   :  { %v498_v44 = vpop.f32.mrf.mxu1 }
 0x365   :  { %v499_v45 = vadd.f32 %v523_v43, %v498_v44 }
 0x366   :  { %v662_v0 = vpop.f32.mrf.mxu1 }
 0x367   :  { %502 = vst [vmem:[#allocation11] sm:$0xff] %v499_v45 }
 0x368   :  { %786 = shalt.err (!%p783_p1)
}
 0x369   :  { %512 = dma.vmem_to_hbm [thread:$0]  %s510_s19, 128, %s948_s9, [#allocation4]  }
 0x36a   :  { %801 = dma.done.wait [#allocation4], 128  }
 0x36b   :  { %802 = vsyncadd [#allocation4], 4294967168 }
 0x36c   :  { %516 = vsyncpa [#allocation3], 1 }
 0x36d   :  { %517 = vsyncpa [#allocation6], 1 }
 0x36e   :  { %518 = vsyncpa [#allocation9], 1 }
 0x36f   :  { %519 = vsyncpa [#allocation4], 1 }

</bundles_post_ra>
